<compile_context>
chip_gen: v6e
topology: v6e:2x2x1
jax: 0.10.0
libtpu: 0.0.40
codegen_flags: <defaults>
</compile_context>

<pallas_src>
import jax
import jax.numpy as jnp
from jax.experimental import pallas as pl
from jax.experimental.pallas import tpu as pltpu

EPS = 1e-5  # BatchNorm2d default eps


def _round_up(a: int, b: int) -> int:
    return ((a + b - 1) // b) * b


def _make_kernel(inv_n: float):
    def kernel(x_ref, wt_ref, g_ref, o_ref, sum_ref, sq_ref, scale_ref, bias_ref):
        p = pl.program_id(0)  # 0 = accumulate stats, 1 = normalize + write
        t = pl.program_id(1)  # row tile

        # Linear (bias=False): fn = x @ W^T, with W^T pre-transposed on the host.
        # bf16 operands, f32 MXU accumulation.
        fn = jnp.dot(x_ref[...], wt_ref[...], preferred_element_type=jnp.float32)

        @pl.when(p == 0)
        def _stats_pass():
            @pl.when(t == 0)
            def _init():
                sum_ref[...] = jnp.zeros_like(sum_ref)
                sq_ref[...] = jnp.zeros_like(sq_ref)

            sum_ref[...] += jnp.sum(fn, axis=0, keepdims=True)
            sq_ref[...] += jnp.sum(fn * fn, axis=0, keepdims=True)

        @pl.when(p == 1)
        def _normalize_pass():
            @pl.when(t == 0)
            def _finalize_stats():
                # Biased variance via E[x^2] - mean^2 (pad rows are zero and we
                # divide by the true N, so stats are exact). Fold gamma into a
                # single per-channel scale/bias; rsqrt runs on the EUP slot.
                mean = sum_ref[...] * inv_n
                var = sq_ref[...] * inv_n - mean * mean
                scale = g_ref[...] * jax.lax.rsqrt(var + EPS)
                scale_ref[...] = scale
                bias_ref[...] = -mean * scale

            o_ref[...] = (fn * scale_ref[...] + bias_ref[...]).astype(o_ref.dtype)

    return kernel


def fnbn_scale(x, weight, gamma, *, tm: int = 256, out_dtype=jnp.float32):
    """Mirrors FNBNScale.forward.

    x:      any shape whose total size is divisible by out_features
            (PyTorch does input.reshape(-1, out_features))
    weight: (out_features, in_features) nn.Linear weight (module requires in == out)
    gamma:  (out_features,)
    Returns (N, out_features, 1, 1) float32, like the PyTorch module.
    """
    out_features, in_features = weight.shape
    assert in_features == out_features, "FNBNScale only works with in_features == out_features"

    x2 = jnp.asarray(x).reshape(-1, out_features)
    n, f = x2.shape

    # Lane-dense feature padding (multiple of 128) and sublane/tile row padding.
    f_pad = _round_up(max(f, 128), 128)
    tm = max(8, min(tm, _round_up(n, 8)))      # row tile, multiple of 8
    n_pad = _round_up(n, tm)
    nt = n_pad // tm

    # bf16 operands for HBM traffic / MXU throughput; f32 accumulation in-kernel.
    x_bf = x2.astype(jnp.bfloat16)
    if (n_pad, f_pad) == (n, f):
        x_p = x_bf
    else:
        x_p = jnp.zeros((n_pad, f_pad), jnp.bfloat16).at[:n, :f].set(x_bf)

    # Transpose the weight ONCE on the host -> (in, out); in-kernel dot is then a
    # plain (tm, K) @ (K, F) contraction on the MXU.
    w_t = jnp.asarray(weight).astype(jnp.bfloat16).T
    if f_pad == f:
        w_p = w_t
    else:
        w_p = jnp.zeros((f_pad, f_pad), jnp.bfloat16).at[:f, :f].set(w_t)

    g2 = jnp.asarray(gamma, jnp.float32).reshape(1, f)
    if f_pad == f:
        g_p = g2
    else:
        g_p = jnp.zeros((1, f_pad), jnp.float32).at[:, :f].set(g2)

    out_itemsize = jnp.dtype(out_dtype).itemsize

    # Explicit VMEM budget: x/out tiles double-buffered + resident W + f32 scratch.
    vmem_bytes = (2 * tm * f_pad * 2               # x tiles (bf16), double-buffered
                  + 2 * f_pad * f_pad * 2          # weight (bf16), conservative x2
                  + 2 * tm * f_pad * out_itemsize  # out tiles, double-buffered
                  + 4 * 8 * f_pad * 4              # f32 scratches (sublane-padded)
                  + (2 << 20))                     # headroom
    vmem_limit = int(min(max(vmem_bytes, 16 * 1024 * 1024), 48 * 1024 * 1024))

    cost = pl.CostEstimate(
        flops=4 * n_pad * f_pad * f_pad,            # matmul done in both passes
        transcendentals=f_pad,                      # rsqrt per channel
        bytes_accessed=(2 * n_pad * f_pad * 2       # x read in both passes (bf16)
                        + f_pad * f_pad * 2         # weight (bf16)
                        + n_pad * f_pad * out_itemsize
                        + f_pad * 4),
    )

    kernel = _make_kernel(1.0 / n)

    out = pl.pallas_call(
        kernel,
        out_shape=jax.ShapeDtypeStruct((n_pad, f_pad), out_dtype),
        grid=(2, nt),
        in_specs=[
            pl.BlockSpec((tm, f_pad), lambda p, t: (t, 0)),       # x row tile
            pl.BlockSpec((f_pad, f_pad), lambda p, t: (0, 0)),    # weight^T, resident
            pl.BlockSpec((1, f_pad), lambda p, t: (0, 0)),        # gamma, resident
        ],
        # During pass 0 the output block index stays (0, 0) so nothing is flushed;
        # pass 1 visits each row tile once and writes lane-dense tiles.
        out_specs=pl.BlockSpec((tm, f_pad), lambda p, t: (p * t, 0)),
        scratch_shapes=[
            pltpu.VMEM((1, f_pad), jnp.float32),  # sum
            pltpu.VMEM((1, f_pad), jnp.float32),  # sum of squares
            pltpu.VMEM((1, f_pad), jnp.float32),  # folded scale
            pltpu.VMEM((1, f_pad), jnp.float32),  # folded bias
        ],
        compiler_params=pltpu.CompilerParams(
            dimension_semantics=("arbitrary", "arbitrary"),
            vmem_limit_bytes=vmem_limit,
        ),
        cost_estimate=cost,
    )(x_p, w_p, g_p)

    # Strip padding and restore PyTorch output shape (N, C, 1, 1).
    return out[:n, :f][:, :, None, None]


if __name__ == "__main__":
    # Module only makes sense with in_features == out_features (forward reshapes
    # input to (-1, out_features) before the Linear).
    in_features = out_features = 32
    batch, seq = 2, 8            # x reshapes to N = 16 rows

    key = jax.random.PRNGKey(0)
    kx, kw, kg = jax.random.split(key, 3)
    x = jax.random.normal(kx, (batch, seq, in_features), dtype=jnp.float32)
    weight = jax.random.normal(kw, (out_features, in_features), dtype=jnp.float32) * 0.1
    gamma = jax.random.normal(kg, (out_features,), dtype=jnp.float32)

    y = jax.block_until_ready(fnbn_scale(x, weight, gamma))

    # Reference in plain JAX (f32 math on the same bf16-rounded operands the kernel sees).
    x_bf = x.reshape(-1, out_features).astype(jnp.bfloat16).astype(jnp.float32)
    w_bf = weight.astype(jnp.bfloat16).astype(jnp.float32)
    fn = x_bf @ w_bf.T
    mean = fn.mean(axis=0, keepdims=True)
    var = ((fn - mean) ** 2).mean(axis=0, keepdims=True)
    ref = ((fn - mean) / jnp.sqrt(var + EPS)) * gamma[None, :]
    ref = ref[:, :, None, None]

    assert y.shape == (batch * seq, out_features, 1, 1), y.shape
    assert jnp.allclose(y, ref, atol=1e-2, rtol=1e-2), float(jnp.max(jnp.abs(y - ref)))
    print("KERNEL_OK")
</pallas_src>

<mosaic_0001>
module attributes {stable_mosaic.version = 11 : i64} {
  func.func @kernel(%arg0: i32, %arg1: i32, %arg2: memref<16x128xbf16, #tpu.memory_space<vmem>>, %arg3: memref<128x128xbf16, #tpu.memory_space<vmem>>, %arg4: memref<1x128xf32, #tpu.memory_space<vmem>>, %arg5: memref<16x128xf32, #tpu.memory_space<vmem>>, %arg6: memref<1x128xf32, #tpu.memory_space<vmem>>, %arg7: memref<1x128xf32, #tpu.memory_space<vmem>>, %arg8: memref<1x128xf32, #tpu.memory_space<vmem>>, %arg9: memref<1x128xf32, #tpu.memory_space<vmem>>) attributes {dimension_semantics = [#tpu.dimension_semantics<arbitrary>, #tpu.dimension_semantics<arbitrary>], iteration_bounds = array<i64: 2, 1>, scalar_prefetch = 0 : i64, scratch_operands = 4 : i64, tpu.core_type = #tpu.core_type<tc>, window_params = [{transform_indices = @transform_0, window_bounds = array<i64: 16, 128>}, {pipeline_mode = #tpu.pipeline_mode<synchronous>, transform_indices = @transform_1, window_bounds = array<i64: 128, 128>}, {pipeline_mode = #tpu.pipeline_mode<synchronous>, transform_indices = @transform_2, window_bounds = array<i64: 1, 128>}, {transform_indices = @transform_3, window_bounds = array<i64: 16, 128>}]} {
    %c0 = arith.constant 0 : index
    %c0_0 = arith.constant 0 : index
    %0 = vector.load %arg2[%c0, %c0_0] : memref<16x128xbf16, #tpu.memory_space<vmem>>, vector<16x128xbf16>
    %c0_1 = arith.constant 0 : index
    %c0_2 = arith.constant 0 : index
    %1 = vector.load %arg3[%c0_1, %c0_2] : memref<128x128xbf16, #tpu.memory_space<vmem>>, vector<128x128xbf16>
    %cst = arith.constant dense<0.000000e+00> : vector<16x128xf32>
    %2 = tpu.matmul %0, %1, %cst {dimension_numbers = #tpu.dot_dimension_numbers<[1], [0], [0], [1], [0, 0, 1, 1], [], []>} : vector<16x128xbf16>, vector<128x128xbf16>, vector<16x128xf32> -> vector<16x128xf32>
    %c0_i32 = arith.constant 0 : i32
    %3 = arith.cmpi eq, %arg0, %c0_i32 : i32
    %4 = arith.extui %3 : i1 to i32
    %c0_i32_3 = arith.constant 0 : i32
    %5 = arith.cmpi ne, %4, %c0_i32_3 : i32
    scf.if %5 {
      %c0_i32_5 = arith.constant 0 : i32
      %9 = arith.cmpi eq, %arg1, %c0_i32_5 : i32
      %10 = arith.extui %9 : i1 to i32
      %c0_i32_6 = arith.constant 0 : i32
      %11 = arith.cmpi ne, %10, %c0_i32_6 : i32
      scf.if %11 {
        %cst_17 = arith.constant 0.000000e+00 : f32
        %23 = vector.broadcast %cst_17 : f32 to vector<1x128xf32>
        %c0_18 = arith.constant 0 : index
        %c0_19 = arith.constant 0 : index
        %24 = vector.load %arg6[%c0_18, %c0_19] : memref<1x128xf32, #tpu.memory_space<vmem>>, vector<1x128xf32>
        tpu.vector_store %arg6[%c0_18, %c0_19], %23 {strides = array<i32>} : memref<1x128xf32, #tpu.memory_space<vmem>>, vector<1x128xf32>,
        %cst_20 = arith.constant 0.000000e+00 : f32
        %25 = vector.broadcast %cst_20 : f32 to vector<1x128xf32>
        %c0_21 = arith.constant 0 : index
        %c0_22 = arith.constant 0 : index
        %26 = vector.load %arg7[%c0_21, %c0_22] : memref<1x128xf32, #tpu.memory_space<vmem>>, vector<1x128xf32>
        tpu.vector_store %arg7[%c0_21, %c0_22], %25 {strides = array<i32>} : memref<1x128xf32, #tpu.memory_space<vmem>>, vector<1x128xf32>,
      } else {
      }
      %c0_7 = arith.constant 0 : index
      %c0_8 = arith.constant 0 : index
      %12 = vector.load %arg6[%c0_7, %c0_8] : memref<1x128xf32, #tpu.memory_space<vmem>>, vector<1x128xf32>
      %cst_9 = arith.constant dense<0.000000e+00> : vector<128xf32>
      %13 = vector.multi_reduction <add>, %2, %cst_9 [0] : vector<16x128xf32> to vector<128xf32>
      %14 = vector.shape_cast %13 : vector<128xf32> to vector<1x128xf32>
      %15 = arith.addf %12, %14 : vector<1x128xf32>
      %c0_10 = arith.constant 0 : index
      %c0_11 = arith.constant 0 : index
      %16 = vector.load %arg6[%c0_10, %c0_11] : memref<1x128xf32, #tpu.memory_space<vmem>>, vector<1x128xf32>
      tpu.vector_store %arg6[%c0_10, %c0_11], %15 {strides = array<i32>} : memref<1x128xf32, #tpu.memory_space<vmem>>, vector<1x128xf32>,
      %c0_12 = arith.constant 0 : index
      %c0_13 = arith.constant 0 : index
      %17 = vector.load %arg7[%c0_12, %c0_13] : memref<1x128xf32, #tpu.memory_space<vmem>>, vector<1x128xf32>
      %18 = arith.mulf %2, %2 : vector<16x128xf32>
      %cst_14 = arith.constant dense<0.000000e+00> : vector<128xf32>
      %19 = vector.multi_reduction <add>, %18, %cst_14 [0] : vector<16x128xf32> to vector<128xf32>
      %20 = vector.shape_cast %19 : vector<128xf32> to vector<1x128xf32>
      %21 = arith.addf %17, %20 : vector<1x128xf32>
      %c0_15 = arith.constant 0 : index
      %c0_16 = arith.constant 0 : index
      %22 = vector.load %arg7[%c0_15, %c0_16] : memref<1x128xf32, #tpu.memory_space<vmem>>, vector<1x128xf32>
      tpu.vector_store %arg7[%c0_15, %c0_16], %21 {strides = array<i32>} : memref<1x128xf32, #tpu.memory_space<vmem>>, vector<1x128xf32>,
    } else {
    }
    %c1_i32 = arith.constant 1 : i32
    %6 = arith.cmpi eq, %arg0, %c1_i32 : i32
    %7 = arith.extui %6 : i1 to i32
    %c0_i32_4 = arith.constant 0 : i32
    %8 = arith.cmpi ne, %7, %c0_i32_4 : i32
    scf.if %8 {
      %c0_i32_5 = arith.constant 0 : i32
      %9 = arith.cmpi eq, %arg1, %c0_i32_5 : i32
      %10 = arith.extui %9 : i1 to i32
      %c0_i32_6 = arith.constant 0 : i32
      %11 = arith.cmpi ne, %10, %c0_i32_6 : i32
      scf.if %11 {
        %c0_13 = arith.constant 0 : index
        %c0_14 = arith.constant 0 : index
        %19 = vector.load %arg6[%c0_13, %c0_14] : memref<1x128xf32, #tpu.memory_space<vmem>>, vector<1x128xf32>
        %cst_15 = arith.constant 6.250000e-02 : f32
        %20 = vector.broadcast %cst_15 : f32 to vector<1x128xf32>
        %21 = arith.mulf %19, %20 : vector<1x128xf32>
        %c0_16 = arith.constant 0 : index
        %c0_17 = arith.constant 0 : index
        %22 = vector.load %arg7[%c0_16, %c0_17] : memref<1x128xf32, #tpu.memory_space<vmem>>, vector<1x128xf32>
        %cst_18 = arith.constant 6.250000e-02 : f32
        %23 = vector.broadcast %cst_18 : f32 to vector<1x128xf32>
        %24 = arith.mulf %22, %23 : vector<1x128xf32>
        %25 = arith.mulf %21, %21 : vector<1x128xf32>
        %26 = arith.subf %24, %25 : vector<1x128xf32>
        %c0_19 = arith.constant 0 : index
        %c0_20 = arith.constant 0 : index
        %27 = vector.load %arg4[%c0_19, %c0_20] : memref<1x128xf32, #tpu.memory_space<vmem>>, vector<1x128xf32>
        %cst_21 = arith.constant 9.99999974E-6 : f32
        %28 = vector.broadcast %cst_21 : f32 to vector<1x128xf32>
        %29 = arith.addf %26, %28 : vector<1x128xf32>
        %30 = math.rsqrt %29 : vector<1x128xf32>
        %31 = arith.mulf %27, %30 : vector<1x128xf32>
        %c0_22 = arith.constant 0 : index
        %c0_23 = arith.constant 0 : index
        %32 = vector.load %arg8[%c0_22, %c0_23] : memref<1x128xf32, #tpu.memory_space<vmem>>, vector<1x128xf32>
        tpu.vector_store %arg8[%c0_22, %c0_23], %31 {strides = array<i32>} : memref<1x128xf32, #tpu.memory_space<vmem>>, vector<1x128xf32>,
        %cst_24 = arith.constant 0.000000e+00 : f32
        %33 = vector.broadcast %cst_24 : f32 to vector<1x128xf32>
        %34 = arith.subf %33, %21 : vector<1x128xf32>
        %35 = arith.mulf %34, %31 : vector<1x128xf32>
        %c0_25 = arith.constant 0 : index
        %c0_26 = arith.constant 0 : index
        %36 = vector.load %arg9[%c0_25, %c0_26] : memref<1x128xf32, #tpu.memory_space<vmem>>, vector<1x128xf32>
        tpu.vector_store %arg9[%c0_25, %c0_26], %35 {strides = array<i32>} : memref<1x128xf32, #tpu.memory_space<vmem>>, vector<1x128xf32>,
      } else {
      }
      %c0_7 = arith.constant 0 : index
      %c0_8 = arith.constant 0 : index
      %12 = vector.load %arg8[%c0_7, %c0_8] : memref<1x128xf32, #tpu.memory_space<vmem>>, vector<1x128xf32>
      %13 = vector.broadcast %12 : vector<1x128xf32> to vector<16x128xf32>
      %14 = arith.mulf %2, %13 : vector<16x128xf32>
      %c0_9 = arith.constant 0 : index
      %c0_10 = arith.constant 0 : index
      %15 = vector.load %arg9[%c0_9, %c0_10] : memref<1x128xf32, #tpu.memory_space<vmem>>, vector<1x128xf32>
      %16 = vector.broadcast %15 : vector<1x128xf32> to vector<16x128xf32>
      %17 = arith.addf %14, %16 : vector<16x128xf32>
      %c0_11 = arith.constant 0 : index
      %c0_12 = arith.constant 0 : index
      %18 = vector.load %arg5[%c0_11, %c0_12] : memref<16x128xf32, #tpu.memory_space<vmem>>, vector<16x128xf32>
      tpu.vector_store %arg5[%c0_11, %c0_12], %17 {strides = array<i32>} : memref<16x128xf32, #tpu.memory_space<vmem>>, vector<16x128xf32>,
    } else {
    }
    return
  }
  func.func @transform_0(%arg0: i32, %arg1: i32) -> (i32, i32) {
    %c0_i32 = arith.constant 0 : i32
    %c0_i32_0 = arith.constant 0 : i32
    return %arg1, %c0_i32 : i32, i32
  }
  func.func @transform_1(%arg0: i32, %arg1: i32) -> (i32, i32) {
    %c0_i32 = arith.constant 0 : i32
    %c0_i32_0 = arith.constant 0 : i32
    %c0_i32_1 = arith.constant 0 : i32
    return %c0_i32, %c0_i32_0 : i32, i32
  }
  func.func @transform_2(%arg0: i32, %arg1: i32) -> (i32, i32) {
    %c0_i32 = arith.constant 0 : i32
    %c0_i32_0 = arith.constant 0 : i32
    %c0_i32_1 = arith.constant 0 : i32
    return %c0_i32, %c0_i32_0 : i32, i32
  }
  func.func @transform_3(%arg0: i32, %arg1: i32) -> (i32, i32) {
    %0 = arith.muli %arg0, %arg1 : i32
    %c0_i32 = arith.constant 0 : i32
    %c0_i32_0 = arith.constant 0 : i32
    return %0, %c0_i32 : i32, i32
  }
}

</mosaic_0001>

<bundles_post_ra>
// kernel: tpu_custom_call.1
= control target key start
LH: loop header
LB: loop body
LE: loop exit
PB: predicated region body
PF: predicated region fallthrough
CT: control target
= control target key end

     0   :  { %8 = vsyncpa [#allocation7], 0  ;;  %s858_s0 = inlined_call_operand.hbm [shape: bf16[16,128], index: 0, kind: input, shape index: {}]   ;;  %s859_s1 = inlined_call_operand.hbm [shape: bf16[128,128], index: 1, kind: input, shape index: {}]   ;;  %s860_s2 = inlined_call_operand.vmem [shape: f32[1,128], index: 2, kind: input, shape index: {}]   ;;  %s861_s3 = inlined_call_operand.hbm [shape: f32[16,128], index: 3, kind: output, shape index: {}]  }
   0x1   :  { %9 = vsyncpa [#allocation10], 0 }
   0x2   :  { %10 = vsyncpa [#allocation8], 0 }
   0x3   :  { %12 = vsyncpa [#allocation8 + $0x1], 0  ;;  %s760_s12 = smov 0   ;;  %s762_s13 = smov 0  }
   0x4   :  { %s764_s14 = smov 0  }
   0x5 LB: > { %s489_s15 = sadd.s32 4294967295, %s728_s14   ;;  %s490_s16 = sadd.s32 4294967294, %s728_s14   ;;  %s728_s14 = sphi %s764_s14, %s18_s14   ;;  %s724_s13 = sphi %s762_s13, %s867_s13   ;;  %s720_s12 = sphi %s760_s12, %s866_s12  }
   0x6   : > { %s30_s17 = sadd.s32 1, %s724_s13  ;;  %p491_p0 = scmp.ge.s32.totalorder %s728_s14, 1 }
   0x7   : > { %p32_p1 = scmp.ge.s32.totalorder %s30_s17, 2  ;;  %p131_p2 = scmp.lt.s32.totalorder %s728_s14, 3 }
   0x8   : > { %p782_p3 = scmp.eq.s32.totalorder %s489_s15, 0  ;;  %s730_s20 = smov [#allocation6]  }
   0x9   : > { %s869_s17 = smov (%p32_p1, %s30_s17), 0  ;;  %p788_p4 = pnand %p491_p0, %p131_p2 }
   0xa   : > { %s146_s21 = sshll.u32 %s730_s20, 4  ;;  %s731_s23 = smov [#allocation9]   ;;  %s147_s21 = int_to_ptr.vmem [resolvable:$true] %s146_s21 }
   0xb   : > { %p555_p5 = pneg %p788_p4  ;;  %s159_s24 = sshll.u32 %s731_s23, 4  ;;  %s160_s24 = int_to_ptr.vmem [resolvable:$true] %s159_s24 }
   0xc   : > { %s629_s25 = scalar_lea.vmem %s147_s21, 128  ;;  %p637_p11 = scmp.lt.s32.totalorder %s147_s21, %s147_s21 }
   0xd   : > { %p796_p6 = pnand %p782_p3, %p555_p5  ;;  %p630_p8 = scmp.ne.s32.totalorder %s147_s21, %s629_s25 }
   0xe   : > { %p638_p12 = scmp.lt.s32.totalorder %s629_s25, %s629_s25 }
   0xf   : > { %p620_p7 = pneg %p796_p6 }
  0x10   : > { %p639_p13 = por %p638_p12, %p637_p11 }
  0x11   : > { %p632_p9 = pnand %p630_p8, %p620_p7 }
  0x13   : > { %p633_p10 = pneg %p632_p9 }
  0x15   : > { %p640_p0 = pnand %p639_p13, %p633_p10 }
  0x17   : > { %643 = shalt.err (!%p640_p0)
}
  0x18   : > { %s732_s26 = smov 64   ;;  %s733_s27 = smov 4  }
  0x19   : > { %558 = dma.hbm_to_vmem [thread:$0]  (!%p796_p6), %s858_s0, 128, %s147_s21, [#allocation7], %s732_s26, %s732_s26, %s733_s27  }
  0x1a   : > { %s655_s30 = scalar_lea.vmem %s160_s24, 1024  ;;  %p663_p8 = scmp.lt.s32.totalorder %s160_s24, %s160_s24 }
  0x1b   : > { %p656_p1 = scmp.ne.s32.totalorder %s160_s24, %s655_s30  ;;  %p664_p9 = scmp.lt.s32.totalorder %s655_s30, %s655_s30 }
  0x1d   : > { %p658_p2 = pnand %p656_p1, %p620_p7  ;;  %p665_p11 = por %p664_p9, %p663_p8 }
  0x1f   : > { %p659_p5 = pneg %p658_p2 }
  0x21   : > { %p666_p10 = pnand %p665_p11, %p659_p5 }
  0x23   : > { %669 = shalt.err (!%p666_p10)
}
  0x24   : > { %561 = dma.hbm_to_vmem [thread:$0]  (!%p796_p6), %s859_s1, 1024, %s160_s24, [#allocation10], %s732_s26, %s732_s26, %s733_s27  }
  0x25   : > { %178 = sbr.rel (%p788_p4) target bundleno = 355 (0x163), region = 32 }
  0x2a   : > { %707 = dma.done.wait (%p782_p3), [#allocation7], 128  }
  0x2b   : > { %709 = vsyncadd (%p782_p3), [#allocation7], 4294967168 }
  0x2c   : > { %711 = dma.done.wait (%p782_p3), [#allocation10], 1024  }
  0x2d   : > { %713 = vsyncadd (%p782_p3), [#allocation10], 4294966272  ;;  %v734_v0 = vmov 0.0   ;;  %vm735_vm0 = vmmov 0   ;;  %v607_v1 = vld [vmem:[#allocation9 + $0x38] sm:$0xff]   ;;  %v608_v2 = vld [vmem:[#allocation9 + $0x30] sm:$0xff]  }
  0x2e   : > { %523 = vmatprep.subr.bf16.mxu0 %v734_v0  ;;  %539 = vmatprep.mubr.msk.bf16.mxu0 %vm735_vm0, %v734_v0  ;;  %v609_v3 = vld [vmem:[#allocation9 + $0x28] sm:$0xff]   ;;  %v610_v4 = vld [vmem:[#allocation9 + $0x20] sm:$0xff]   ;;  %v611_v5 = vld [vmem:[#allocation9 + $0x18] sm:$0xff]   ;;  %p506_p3 = scmp.ne.s32.totalorder %s720_s12, 0 }
  0x2f   : > { %524 = vmatpush3.bf16.msra.mxu0 %v607_v1  ;;  %v612_v6 = vld [vmem:[#allocation9 + $0x10] sm:$0xff]   ;;  %v613_v7 = vld [vmem:[#allocation9 + $0x8] sm:$0xff]   ;;  %v614_v8 = vld [vmem:[#allocation9] sm:$0xff]  }
  0x30   : > { %525 = vmatprep.subr.bf16.mxu0 %v734_v0  ;;  %v615_v9 = vld [vmem:[#allocation6] sm:$0xff]  }
  0x33   : > { %526 = vmatpush3.bf16.msra.mxu0 %v608_v2 }
  0x34   : > { %527 = vmatprep.subr.bf16.mxu0 %v734_v0 }
  0x37   : > { %528 = vmatpush3.bf16.msra.mxu0 %v609_v3 }
  0x38   : > { %529 = vmatprep.subr.bf16.mxu0 %v734_v0 }
  0x3b   : > { %530 = vmatpush3.bf16.msra.mxu0 %v610_v4 }
  0x3c   : > { %531 = vmatprep.subr.bf16.mxu0 %v734_v0 }
  0x3f   : > { %532 = vmatpush3.bf16.msra.mxu0 %v611_v5 }
  0x40   : > { %533 = vmatprep.subr.bf16.mxu0 %v734_v0 }
  0x43   : > { %534 = vmatpush3.bf16.msra.mxu0 %v612_v6 }
  0x44   : > { %535 = vmatprep.subr.bf16.mxu0 %v734_v0 }
  0x47   : > { %536 = vmatpush3.bf16.msra.mxu0 %v613_v7 }
  0x48   : > { %537 = vmatprep.subr.bf16.mxu0 %v734_v0 }
  0x4b   : > { %538 = vmatpush3.bf16.msra.mxu0 %v614_v8 }
  0x4e   : > { %540 = vmatmul.mubr.bf16.vlgmr.msra.gmra.mxu0 %v615_v9 }
 0x10e   : > { %v311_v10 = vpop.f32.mrf.mxu0 }
 0x110   : > { %v541_v11 = vpop.f32.mrf.mxu0  ;;  %321 = sbr.rel (%p506_p3) target bundleno = 296 (0x128), region = 44 }
 0x112   : > { %v314_v12 = vpop.f32.mrf.mxu0 }
 0x114   : > { %v542_v13 = vpop.f32.mrf.mxu0 }
 0x115   : > { %v329_v14 = vadd.f32 %v314_v12, %v311_v10  ;;  %v339_v15 = vmul.f32 %v311_v10, %v311_v10  ;;  %v340_v16 = vmul.f32 %v314_v12, %v314_v12  ;;  %v736_v17 = vmov 0.0  }
 0x116   : > { %326 = vst [vmem:[#allocation2] sm:$0x1] %v736_v17  ;;  %327 = vst [vmem:[#allocation3] sm:$0x1] %v736_v17 }
 0x117   : > { %v330_v18 = vrot.slane %v329_v14, 4  ;;  %v341_v19 = vadd.f32 %v340_v16, %v339_v15 }
 0x119   : > { %v331_v20 = vadd.f32 %v330_v18, %v329_v14  ;;  %v342_v21 = vrot.slane %v341_v19, 4 }
 0x11b   : > { %v332_v22 = vrot.slane %v331_v20, 2  ;;  %v343_v23 = vadd.f32 %v342_v21, %v341_v19 }
 0x11d   : > { %v333_v24 = vadd.f32 %v332_v22, %v331_v20  ;;  %v344_v25 = vrot.slane %v343_v23, 2  ;;  %v328_v28 = vld [vmem:[#allocation2] sm:$0x1]  ;;  %v338_v31 = vld [vmem:[#allocation3] sm:$0x1] }
 0x11f   : > { %v334_v26 = vrot.slane %v333_v24, 1  ;;  %v345_v27 = vadd.f32 %v344_v25, %v343_v23 }
 0x121   : > { %v335_v29 = vadd.f32 %v334_v26, %v333_v24  ;;  %v346_v30 = vrot.slane %v345_v27, 1 }
 0x123   : > { %v336_v32 = vadd.f32 %v335_v29, %v328_v28  ;;  %v347_v33 = vadd.f32 %v346_v30, %v345_v27 }
 0x125   : > { %337 = vst [vmem:[#allocation2] sm:$0x1] %v336_v32  ;;  %v348_v34 = vadd.f32 %v347_v33, %v338_v31 }
 0x127   : > { %349 = vst [vmem:[#allocation3] sm:$0x1] %v348_v34 }
 0x128 PF: > { %p507_p4 = scmp.ne.s32.totalorder %s720_s12, 1 }
 0x12a   : > { %353 = sbr.rel (%p507_p4) target bundleno = 341 (0x155), region = 52 }
 0x12f   : > { %v358_v35 = vld [vmem:[#allocation2] sm:$0x1]  ;;  %v360_v36 = vld [vmem:[#allocation3] sm:$0x1] }
 0x130   : > { %v359_v37 = vmul.f32 0.0625, %v358_v35  ;;  %v361_v38 = vmul.f32 0.0625, %v360_v36  ;;  %v364_v42 = vld [vmem:[%s860_s2] sm:$0x1] }
 0x132   : > { %v362_v39 = vmul.f32 %v359_v37, %v359_v37  ;;  %v369_v43 = vsub.f32 0.0, %v359_v37 }
 0x134   : > { %v363_v40 = vsub.f32 %v361_v38, %v362_v39 }
 0x136   : > { %v365_v41 = vadd.f32 1e-05, %v363_v40 }
 0x138   : > { %616 = vrsqrt.f32 %v365_v41 }
 0x145   : > { %v617_v44 = vpop.eup %616 }
 0x146   : > { %v367_v45 = vmul.f32 %v617_v44, %v364_v42 }
 0x148   : > { %368 = vst [vmem:[#allocation4] sm:$0x1] %v367_v45  ;;  %v370_v46 = vmul.f32 %v369_v43, %v367_v45 }
 0x14a   : > { %371 = vst [vmem:[#allocation5] sm:$0x1] %v370_v46 }
 0x14f   : > { %v508_v47 = vld [vmem:[#allocation4] ss:$0 sm:$0xff] }
 0x150   : > { %v379_v48 = vmul.f32 %v508_v47, %v311_v10  ;;  %v380_v49 = vmul.f32 %v508_v47, %v314_v12 }
 0x151   : > { %v509_v50 = vld [vmem:[#allocation5] ss:$0 sm:$0xff] }
 0x152   : > { %v388_v51 = vadd.f32 %v509_v50, %v379_v48  ;;  %v389_v52 = vadd.f32 %v509_v50, %v380_v49 }
 0x154   : > { %390 = vst [vmem:[#allocation11] sm:$0xff] %v388_v51  ;;  %391 = vst [vmem:[#allocation11 + $0x8] sm:$0xff] %v389_v52 }
 0x155 PF: > { %p835_p6 = scmp.eq.s32.totalorder %s489_s15, 1  ;;  %s737_s9 = smov [#allocation11]  }
 0x156   : > { %s407_s10 = sshll.u32 %s737_s9, 4  ;;  %s408_s10 = int_to_ptr.vmem [resolvable:$true] %s407_s10 }
 0x157   : > { %s670_s11 = scalar_lea.vmem %s408_s10, 256  ;;  %s676_s12 = scalar_lea.vmem %s408_s10, 512 }
 0x158   : > { %p671_p7 = scmp.ne.s32.totalorder %s408_s10, %s670_s11  ;;  %p677_p0 = scmp.lt.s32.totalorder %s408_s10, %s408_s10 }
 0x159   : > { %p678_p1 = scmp.lt.s32.totalorder %s676_s12, %s670_s11 }
 0x15a   : > { %p672_p12 = pnand %p671_p7, %p835_p6 }
 0x15b   : > { %p679_p2 = por %p678_p1, %p677_p0 }
 0x15c   : > { %p673_p13 = pneg %p672_p12 }
 0x15e   : > { %p680_p5 = pnand %p679_p2, %p673_p13 }
 0x160   : > { %683 = shalt.err (!%p680_p5)
}
 0x161   : > { %s738_s18 = smov 128   ;;  %s739_s15 = smov 8  }
 0x162   : > { %552 = dma.vmem_to_hbm [thread:$0]  (%p835_p6), %s408_s10, 256, %s861_s3, [#allocation8], %s738_s18, %s738_s18, %s739_s15  }
 0x163 PF: > { %p571_p8 = scmp.ge.s32.totalorder %s728_s14, 2  ;;  %p572_p9 = scmp.eq.s32.totalorder %s490_s16, 1 }
 0x165   : > { %p563_p11 = pnand %p572_p9, %p571_p8 }
 0x167   : > { %p564_p10 = pneg %p563_p11 }
 0x169   : > { %715 = dma.done.wait (%p564_p10), [#allocation8], 256  }
 0x16a   : > { %717 = vsyncadd (%p564_p10), [#allocation8], 4294967040  ;;  %s18_s14 = sadd.s32 1, %s728_s14   ;;  %s866_s12 = smov %s724_s13 }
 0x16b   : > { %p15_p3 = scmp.ge.s32.totalorder %s18_s14, 4   ;;  %s867_s13 = smov %s869_s17 }
 0x16d   :  { %17 = sbr.rel (!%p15_p3) target bundleno = 5 (0x5), region = 90 }
 0x172   :  { %428 = vsyncpa [#allocation7], 1 }
 0x173   :  { %430 = vsyncpa [#allocation7 + $0x1], 1 }
 0x174   :  { %431 = vsyncpa [#allocation10], 1 }
 0x175   :  { %432 = vsyncpa [#allocation8], 1 }
 0x176   :  { %434 = vsyncpa [#allocation8 + $0x1], 1 }

</bundles_post_ra>
